<compile_context>
chip_gen: v7x
topology: tpu7x:2x2x1
jax: 0.10.0
libtpu: 0.0.40
codegen_flags: <defaults>
</compile_context>

<pallas_src>
import functools

import jax
import jax.numpy as jnp
from jax.experimental import pallas as pl
from jax.experimental.pallas import tpu as pltpu

LANE = 128
MIB = 1024 * 1024


def _round_up(x, m):
    return ((x + m - 1) // m) * m


def _vmem_capacity_bytes():
    # Physical VMEM per core: 128 MiB on v5e/v6e, 64 MiB on v7x.
    try:
        return int(pltpu.get_tpu_info().vmem_capacity_bytes)
    except Exception:
        return 64 * MIB  # conservative (v7x) fallback


# ------------------- feature transform kernel: Z = X @ W ---------------------

def _ft_kernel(x_ref, w_ref, out_ref):
    out_ref[...] = jnp.dot(
        x_ref[...], w_ref[...], preferred_element_type=jnp.float32
    ).astype(out_ref.dtype)


def feature_transform(x, w, *, tm):
    n_pad, f = x.shape
    hp = w.shape[1]
    return pl.pallas_call(
        _ft_kernel,
        out_shape=jax.ShapeDtypeStruct((n_pad, hp), jnp.bfloat16),
        grid_spec=pltpu.PrefetchScalarGridSpec(
            num_scalar_prefetch=0,
            grid=(n_pad // tm,),
            in_specs=[
                pl.BlockSpec((tm, f), lambda i: (i, 0)),
                pl.BlockSpec((f, hp), lambda i: (0, 0)),
            ],
            out_specs=pl.BlockSpec((tm, hp), lambda i: (i, 0)),
        ),
        compiler_params=pltpu.CompilerParams(
            dimension_semantics=("parallel",),
        ),
    )(x, w)


# ---------------- propagation kernel: out = epilogue(A_hat @ Z + b) ----------
#   mode == "fused_relu_ft":  out = (relu(A @ Z + b1) @ W2)          (bf16 out)
#   mode == "log_softmax":    out = log_softmax(A @ Z + b2, axis=1)  (f32 out)

def _prop_kernel(*refs, mode, num_valid, resident_z, tk):
    if mode == "fused_relu_ft":
        a_ref, z_ref, b_ref, w_ref, out_ref, acc_ref = refs
    else:
        a_ref, z_ref, b_ref, out_ref, acc_ref = refs
        w_ref = None

    k = pl.program_id(1)

    @pl.when(k == 0)
    def _():
        acc_ref[...] = jnp.zeros_like(acc_ref)

    if resident_z:
        start = pl.multiple_of(k * tk, LANE)
        z_tile = z_ref[pl.ds(start, tk), :]
    else:
        z_tile = z_ref[...]

    acc_ref[...] += jnp.dot(
        a_ref[...], z_tile, preferred_element_type=jnp.float32
    )

    @pl.when(k == pl.num_programs(1) - 1)
    def _():
        h = acc_ref[...] + b_ref[...]               # bias only in the epilogue
        if mode == "fused_relu_ft":
            h1 = jnp.maximum(h, 0.0).astype(jnp.bfloat16)
            out_ref[...] = jnp.dot(
                h1, w_ref[...], preferred_element_type=jnp.float32
            ).astype(out_ref.dtype)
        else:  # "log_softmax" over the class axis, padded lanes masked
            col = jax.lax.broadcasted_iota(jnp.int32, h.shape, 1)
            valid = col < num_valid
            hm = jnp.where(valid, h, -jnp.inf)
            m = jnp.max(hm, axis=1, keepdims=True)
            z = h - m
            p = jnp.where(valid, jnp.exp(z), 0.0)
            lse = jnp.log(jnp.sum(p, axis=1, keepdims=True))
            out_ref[...] = (z - lse).astype(out_ref.dtype)


def propagate(a, z, b, w2=None, *, mode, num_valid, tm, tk, resident_z,
              out_width, out_dtype, vmem_limit):
    n_pad = a.shape[0]
    hp_in = z.shape[1]
    kernel = functools.partial(
        _prop_kernel, mode=mode, num_valid=num_valid,
        resident_z=resident_z, tk=tk)

    if resident_z:
        # Whole Z lives in VMEM (constant index map -> DMA'd once, no re-read).
        z_spec = pl.BlockSpec((n_pad, hp_in), lambda i, k: (0, 0))
    else:
        z_spec = pl.BlockSpec((tk, hp_in), lambda i, k: (k, 0))

    in_specs = [
        pl.BlockSpec((tm, tk), lambda i, k: (i, k)),      # A_hat tile
        z_spec,                                           # Z (resident or tile)
        pl.BlockSpec((1, b.shape[1]), lambda i, k: (0, 0)),  # bias
    ]
    args = [a, z, b]
    if mode == "fused_relu_ft":
        in_specs.append(pl.BlockSpec(w2.shape, lambda i, k: (0, 0)))  # W2 resident
        args.append(w2)

    return pl.pallas_call(
        kernel,
        out_shape=jax.ShapeDtypeStruct((n_pad, out_width), out_dtype),
        grid_spec=pltpu.PrefetchScalarGridSpec(
            num_scalar_prefetch=0,
            grid=(n_pad // tm, n_pad // tk),              # reduction axis last
            in_specs=in_specs,
            out_specs=pl.BlockSpec((tm, out_width), lambda i, k: (i, 0)),
            scratch_shapes=[pltpu.VMEM((tm, hp_in), jnp.float32)],
        ),
        compiler_params=pltpu.CompilerParams(
            dimension_semantics=("parallel", "arbitrary"),
            vmem_limit_bytes=vmem_limit,
        ),
    )(*args)


# ------------------------------ forward pass ---------------------------------

def gcn_forward(a_hat, x, w1, b1, w2, b2):
    n, f = x.shape
    hidden = w1.shape[1]
    num_classes = w2.shape[1]

    hp = _round_up(hidden, LANE)
    cp = _round_up(num_classes, LANE)

    # ---- tile selection: big row tiles, >=2 row tiles when possible (v7x) ----
    n_pad0 = _round_up(n, LANE)
    TM_TARGET = 1024
    if n_pad0 >= 2 * TM_TARGET:
        tm = TM_TARGET
    elif n_pad0 >= 2 * LANE:
        tm = (n_pad0 // 2) // LANE * LANE       # at least two row tiles
    else:
        tm = n_pad0                              # tiny graph: single tile
    n_pad = _round_up(n_pad0, tm)                # pad N to a multiple of tm
    tk = next(t for t in (1024, 512, 256, 128) if n_pad % t == 0)

    # ---- VMEM budget: resident-Z decision + explicit vmem limit --------------
    cap = _vmem_capacity_bytes()
    budget = int(cap * 0.75)
    hp_max = max(hp, cp)
    common = (2 * tm * tk * 2          # A tile, double-buffered, bf16
              + 2 * hp * cp * 2        # resident W2 (fused epilogue)
              + 2 * tm * cp * 4        # output tile, f32 worst case
              + tm * hp_max * 4        # f32 accumulator
              + 2 * MIB)               # bias / slack
    need_resident = common + 2 * n_pad * hp_max * 2
    resident_z = need_resident <= budget
    need = need_resident if resident_z else common + 2 * tk * hp_max * 2
    vmem_limit = min(cap, max(32 * MIB, _round_up(need, MIB)))

    # ---- pad / cast inputs (bf16 A + activations, f32 bias) -------------------
    bf16 = jnp.bfloat16
    a_p = jnp.zeros((n_pad, n_pad), bf16).at[:n, :n].set(a_hat.astype(bf16))
    x_p = jnp.zeros((n_pad, f), bf16).at[:n, :].set(x.astype(bf16))
    w1_p = jnp.zeros((f, hp), bf16).at[:, :hidden].set(w1.astype(bf16))
    w2_p = jnp.zeros((hp, cp), bf16).at[:hidden, :num_classes].set(w2.astype(bf16))
    b1_p = jnp.zeros((1, hp), jnp.float32).at[:, :hidden].set(
        jnp.reshape(b1, (1, -1)).astype(jnp.float32))
    b2_p = jnp.zeros((1, cp), jnp.float32).at[:, :num_classes].set(
        jnp.reshape(b2, (1, -1)).astype(jnp.float32))

    # Layer 1 transform: Z1 = X @ W1
    z1 = feature_transform(x_p, w1_p, tm=tm)                       # (Np, Hp) bf16

    # Layer 1 propagate + fused layer-2 transform:
    #   Z2 = relu(A_hat @ Z1 + b1) @ W2        (dropout = identity, eval mode)
    z2 = propagate(a_p, z1, b1_p, w2_p, mode="fused_relu_ft", num_valid=hidden,
                   tm=tm, tk=tk, resident_z=resident_z, out_width=cp,
                   out_dtype=bf16, vmem_limit=vmem_limit)          # (Np, Cp) bf16

    # Layer 2 propagate: out = log_softmax(A_hat @ Z2 + b2)
    out_p = propagate(a_p, z2, b2_p, mode="log_softmax", num_valid=num_classes,
                      tm=tm, tk=tk, resident_z=resident_z, out_width=cp,
                      out_dtype=jnp.float32, vmem_limit=vmem_limit)  # (Np, Cp) f32

    return out_p[:n, :num_classes]


# ---------------------------------- glue -------------------------------------

def build_normalized_adjacency(edge_index, num_nodes):
    """Dense GCN normalization matching PyG gcn_norm: messages flow src->dst,
    degrees come from the dst index after adding self loops, and
    A_hat[i, j] = d_i^{-1/2} d_j^{-1/2} for edge j -> i.
    Note: duplicate edges are deduplicated by the dense construction."""
    src, dst = edge_index[0], edge_index[1]
    a = jnp.zeros((num_nodes, num_nodes), dtype=jnp.float32)
    a = a.at[dst, src].set(1.0)                  # A[i, j] = 1 for edge j -> i
    a = jnp.maximum(a, jnp.eye(num_nodes, dtype=jnp.float32))   # self loops
    deg = jnp.sum(a, axis=1)                     # in-degree + 1 (PyG col scatter)
    dinv_sqrt = jnp.where(deg > 0, 1.0 / jnp.sqrt(deg), 0.0)
    return dinv_sqrt[:, None] * a * dinv_sqrt[None, :]


def glorot(key, shape):
    fan_in, fan_out = shape
    limit = jnp.sqrt(6.0 / (fan_in + fan_out))
    return jax.random.uniform(key, shape, jnp.float32, -limit, limit)


if __name__ == "__main__":
    # Small deterministic problem: N nodes, point_features, hidden=16, num_classes.
    N = 64
    point_features = 8
    hidden = 16
    num_classes = 4
    num_edges = 256

    key = jax.random.PRNGKey(0)
    k_x, k_e, k_w1, k_w2 = jax.random.split(key, 4)

    x = jax.random.normal(k_x, (N, point_features), dtype=jnp.float32)   # data.x
    edge_index = jax.random.randint(k_e, (2, num_edges), 0, N, dtype=jnp.int32)

    w1 = glorot(k_w1, (point_features, hidden))
    b1 = jnp.zeros((hidden,), dtype=jnp.float32)
    w2 = glorot(k_w2, (hidden, num_classes))
    b2 = jnp.zeros((num_classes,), dtype=jnp.float32)

    a_hat = build_normalized_adjacency(edge_index, N)

    out = jax.block_until_ready(gcn_forward(a_hat, x, w1, b1, w2, b2))

    # Plain-JAX f32 reference (same eval-mode dropout semantics).
    ref_h1 = jnp.maximum(a_hat @ (x @ w1) + b1[None, :], 0.0)
    ref_h2 = a_hat @ (ref_h1 @ w2) + b2[None, :]
    ref = jax.nn.log_softmax(ref_h2, axis=1)

    row_sums = jnp.sum(jnp.exp(out), axis=1)
    assert out.shape == (N, num_classes)
    assert bool(jnp.all(jnp.abs(row_sums - 1.0) < 1e-4))
    assert bool(jnp.max(jnp.abs(out - ref)) < 0.1)   # bf16 A-path tolerance

    print("KERNEL_OK")
</pallas_src>

<mosaic_0001>
module attributes {stable_mosaic.version = 11 : i64} {
  func.func @_ft_kernel(%arg0: i32, %arg1: memref<128x8xbf16, #tpu.memory_space<vmem>>, %arg2: memref<8x128xbf16, #tpu.memory_space<vmem>>, %arg3: memref<128x128xbf16, #tpu.memory_space<vmem>>) attributes {dimension_semantics = [#tpu.dimension_semantics<parallel>], iteration_bounds = array<i64: 1>, scalar_prefetch = 0 : i64, scratch_operands = 0 : i64, tpu.core_type = #tpu.core_type<tc>, window_params = [{transform_indices = @transform_0, window_bounds = array<i64: 128, 8>}, {pipeline_mode = #tpu.pipeline_mode<synchronous>, transform_indices = @transform_1, window_bounds = array<i64: 8, 128>}, {transform_indices = @transform_2, window_bounds = array<i64: 128, 128>}]} {
    %c0 = arith.constant 0 : index
    %c0_0 = arith.constant 0 : index
    %0 = vector.load %arg1[%c0, %c0_0] : memref<128x8xbf16, #tpu.memory_space<vmem>>, vector<128x8xbf16>
    %c0_1 = arith.constant 0 : index
    %c0_2 = arith.constant 0 : index
    %1 = vector.load %arg2[%c0_1, %c0_2] : memref<8x128xbf16, #tpu.memory_space<vmem>>, vector<8x128xbf16>
    %cst = arith.constant dense<0.000000e+00> : vector<128x128xf32>
    %2 = tpu.matmul %0, %1, %cst {dimension_numbers = #tpu.dot_dimension_numbers<[1], [0], [0], [1], [0, 0, 1, 1], [], []>} : vector<128x8xbf16>, vector<8x128xbf16>, vector<128x128xf32> -> vector<128x128xf32>
    %3 = arith.truncf %2 : vector<128x128xf32> to vector<128x128xbf16>
    %c0_3 = arith.constant 0 : index
    %c0_4 = arith.constant 0 : index
    %4 = vector.load %arg3[%c0_3, %c0_4] : memref<128x128xbf16, #tpu.memory_space<vmem>>, vector<128x128xbf16>
    tpu.vector_store %arg3[%c0_3, %c0_4], %3 {strides = array<i32>} : memref<128x128xbf16, #tpu.memory_space<vmem>>, vector<128x128xbf16>,
    return
  }
  func.func @transform_0(%arg0: i32) -> (i32, i32) {
    %c0_i32 = arith.constant 0 : i32
    %c0_i32_0 = arith.constant 0 : i32
    return %arg0, %c0_i32 : i32, i32
  }
  func.func @transform_1(%arg0: i32) -> (i32, i32) {
    %c0_i32 = arith.constant 0 : i32
    %c0_i32_0 = arith.constant 0 : i32
    %c0_i32_1 = arith.constant 0 : i32
    return %c0_i32, %c0_i32_0 : i32, i32
  }
  func.func @transform_2(%arg0: i32) -> (i32, i32) {
    %c0_i32 = arith.constant 0 : i32
    %c0_i32_0 = arith.constant 0 : i32
    return %arg0, %c0_i32 : i32, i32
  }
}

</mosaic_0001>

<bundles_post_ra>
// kernel: tpu_custom_call.1
= control target key start
LH: loop header
LB: loop body
LE: loop exit
PB: predicated region body
PF: predicated region fallthrough
CT: control target
= control target key end

     0   :  { %vm95_vm0 = vcmask 1043456   ;;  %vm70_vm1 = vcmask 64512   ;;  %s518_s0 = inlined_call_operand.vmem [shape: bf16[128,8], index: 0, kind: input, shape index: {}]   ;;  %s519_s1 = inlined_call_operand.vmem [shape: bf16[8,128], index: 1, kind: input, shape index: {}]   ;;  %s520_s2 = inlined_call_operand.hbm [shape: bf16[128,128], index: 2, kind: output, shape index: {}]  }
   0x1   :  { %v29_v0 = vld [vmem:[%s519_s1] sm:$0xf]  ;;  %v423_v4 = vld [vmem:[%s518_s0 + $0x8] sm:$0xff]   ;;  %v425_v6 = vld [vmem:[%s518_s0 + $0x10] sm:$0xff]  }
   0x2   :  { %v421_v1 = vld [vmem:[%s518_s0] sm:$0xff]   ;;  %416 = vmatprep.subr.msk.bf16.mxu0 %vm95_vm0, %v29_v0  ;;  %417 = vmatprep.subr.msk.bf16.mxu1 %vm95_vm0, %v29_v0  ;;  %v97_v2 = vsel %vm95_vm0, %v29_v0, 0  ;;  %v424_v5 = vld [vmem:[%s518_s0 + $0x28] sm:$0xff]   ;;  %v426_v7 = vld [vmem:[%s518_s0 + $0x30] sm:$0xff]  }
   0x3   :  { %397 = vmatpush3.bf16.msra.mxu0 %v97_v2  ;;  %415 = vmatpush3.bf16.msra.mxu1 %v97_v2  ;;  %v422_v3 = vld [vmem:[%s518_s0 + $0x20] sm:$0xff]  }
   0x4   :  { %398 = vmatprep.mubr.msk.bf16.mxu0 %vm70_vm1, %v421_v1  ;;  %406 = vmatprep.mubr.msk.bf16.mxu1 %vm70_vm1, %v422_v3 }
   0x6   :  { %399 = vmatmul.mubr.msk.bf16.vlgmr.msra.gmra.mrb[0].mxu0 %vm70_vm1, %v423_v4  ;;  %407 = vmatmul.mubr.msk.bf16.vlgmr.msra.gmra.mrb[0].mxu1 %vm70_vm1, %v424_v5 }
   0x7   :  { %402 = vmatprep.mubr.msk.bf16.mxu0 %vm70_vm1, %v425_v6  ;;  %410 = vmatprep.mubr.msk.bf16.mxu1 %vm70_vm1, %v426_v7 }
   0x8   :  { %7 = vsyncpa [#allocation3], 0  ;;  %v427_v8 = vld [vmem:[%s518_s0 + $0x18] sm:$0xff]  }
   0x9   :  { %v428_v9 = vld [vmem:[%s518_s0 + $0x38] sm:$0xff]   ;;  %s453_s0 = smov [#allocation2]  }
   0xa   :  { %s281_s26 = sshll.u32 %s453_s0, 4  ;;  %s282_s26 = int_to_ptr.vmem [resolvable:$true] %s281_s26 }
   0xb   :  { %s429_s27 = scalar_lea.vmem %s282_s26, 1024  ;;  %p434_p1 = scmp.lt.s32.totalorder %s282_s26, %s282_s26 }
   0xc   :  { %p430_p0 = scmp.ne.s32.totalorder %s282_s26, %s429_s27  ;;  %p435_p2 = scmp.lt.s32.totalorder %s429_s27, %s429_s27 }
   0xe   :  { %403 = vmatmul.mubr.msk.bf16.gmra.mrb[4].mxu0 %vm70_vm1, %v427_v8  ;;  %411 = vmatmul.mubr.msk.bf16.gmra.mrb[4].mxu1 %vm70_vm1, %v428_v9  ;;  %p436_p3 = por %p435_p2, %p434_p1 }
  0x10   :  { %p437_p4 = pnand %p436_p3, %p430_p0 }
  0xd9   :  { %v400_v10 = vpop.f32.mrb[0].mxu0  ;;  %v408_v11 = vpop.f32.mrb[0].mxu1 }
  0xda   :  { %v133_v12 = vpop.f32.mrb[1].mxu0  ;;  %v165_v13 = vpop.f32.mrb[1].mxu1 }
  0xdb   :  { %v401_v14 = vpop.f32.mrb[2].mxu0  ;;  %v409_v16 = vpop.f32.mrb[2].mxu1 }
  0xdc   :  { %v348_v15 = vpack.c.bf16 %v401_v14, %v400_v10  ;;  %v136_v17 = vpop.f32.mrb[3].mxu0  ;;  %v368_v18 = vpack.c.bf16 %v409_v16, %v408_v11  ;;  %v168_v20 = vpop.f32.mrb[3].mxu1 }
  0xdd   :  { %v343_v19 = vpack.c.bf16 %v136_v17, %v133_v12  ;;  %v363_v21 = vpack.c.bf16 %v168_v20, %v165_v13 }
  0xde   :  { %380 = vst [vmem:[#allocation2 + $0x8] sm:$0xff] %v348_v15   ;;  %384 = vst [vmem:[#allocation2 + $0x28] sm:$0xff] %v368_v18  }
  0xdf   :  { %344 = vst [vmem:[#allocation2] sm:$0xff] %v343_v19   ;;  %383 = vst [vmem:[#allocation2 + $0x20] sm:$0xff] %v363_v21  }
  0xe1   :  { %v404_v22 = vpop.f32.mrb[4].mxu0  ;;  %v412_v23 = vpop.f32.mrb[4].mxu1 }
  0xe2   :  { %v149_v24 = vpop.f32.mrb[5].mxu0  ;;  %v181_v25 = vpop.f32.mrb[5].mxu1 }
  0xe3   :  { %v405_v26 = vpop.f32.mrb[6].mxu0  ;;  %v413_v28 = vpop.f32.mrb[6].mxu1 }
  0xe4   :  { %v358_v27 = vpack.c.bf16 %v405_v26, %v404_v22  ;;  %v152_v29 = vpop.f32.mrb[7].mxu0  ;;  %v378_v30 = vpack.c.bf16 %v413_v28, %v412_v23  ;;  %v184_v32 = vpop.f32.mrb[7].mxu1 }
  0xe5   :  { %v353_v31 = vpack.c.bf16 %v152_v29, %v149_v24  ;;  %v373_v33 = vpack.c.bf16 %v184_v32, %v181_v25 }
  0xe6   :  { %382 = vst [vmem:[#allocation2 + $0x18] sm:$0xff] %v358_v27   ;;  %386 = vst [vmem:[#allocation2 + $0x38] sm:$0xff] %v378_v30  }
  0xe7   :  { %381 = vst [vmem:[#allocation2 + $0x10] sm:$0xff] %v353_v31   ;;  %385 = vst [vmem:[#allocation2 + $0x30] sm:$0xff] %v373_v33  }
  0xe8   :  { %440 = shalt.err (!%p437_p4)
}
  0xe9   :  { %s441_s30 = scalar_lea.hbm %s520_s2, 1024 }
  0xea   :  { %p442_p5 = scmp.ne.s32.totalorder %s520_s2, %s441_s30  ;;  %p445_p6 = scmp.lt.u32.totalorder %s441_s30, %s520_s2 }
  0xec   :  { %p447_p7 = pnand %p445_p6, %p442_p5 }
  0xee   :  { %450 = shalt.err (!%p447_p7)
}
  0xef   :  { %s454_s7 = smov 64   ;;  %s455_s8 = smov 4  }
  0xf0   :  { %287 = dma.vmem_to_hbm [thread:$0]  %s282_s26, 1024, %s520_s2, [#allocation3], %s454_s7, %s454_s7, %s455_s8  }
  0xf1   :  { %451 = dma.done.wait [#allocation3], 1024  }
  0xf2   :  { %452 = vsyncadd [#allocation3], 4294966272 }
  0xf3   :  { %291 = vsyncpa [#allocation3], 1 }

</bundles_post_ra>
